<compile_context>
chip_gen: v7x
topology: tpu7x:2x2x1
jax: 0.10.0
libtpu: 0.0.40
codegen_flags: <defaults>
</compile_context>

<pallas_src>
import jax
import jax.numpy as jnp
from jax.experimental import pallas as pl
from jax.experimental.pallas import tpu as pltpu

# ---- problem sizes (small, consistent with the module) ----------------------
B = 2            # batch (dialogues)
N = 8            # utterances per dialogue
D = 32           # feat_dim
H_GAT = 4        # graph_att_heads   (D % H_GAT == 0)
H_EAT = 4        # emo_att_heads
DH_GAT = D // H_GAT
DH_EAT = D // H_EAT
E = 8            # number of emotion embeddings
BN = B * N       # flattened utterance axis
D2 = 2 * D       # lane-packed [gat | emo] activations / outputs
GH = 2 * H_GAT   # (graph, head) slabs
L_GAT = GH * BN  # folded GAT score lanes  = 128
L_EAT = H_EAT * E  # folded emotion score lanes = 32

NEG_INF = -1e9
LEAKY_SLOPE = 0.2

# ---- packed weight/constant slab layout (rows multiples of 8, 128 lanes) ----
_SLAB_ENTRIES = (
    ("w_src_exp", D2, L_GAT),    # x -> f_src expanded to (g,h,q) lanes
    ("w_dst_exp", D2, L_GAT),    # x -> f_dst expanded to (g,h,q) lanes
    ("w_cat",     D2, D2),       # x -> [Wh_same | Wh_diff]
    ("eye_sel",   BN, L_GAT),    # [row == q] selector (dst row->lane fold)
    ("seg_gh",    L_GAT, L_GAT), # per-(g,h) block-ones (segmented softmax sum)
    ("rep_sel",   L_GAT, BN),    # replicate Wh rows to (g,h,q) rows
    ("agg_mask",  L_GAT, D2),    # [g==g'] * [head(d)==h] aggregation mask
    ("wqkt",      D2, L_EAT),    # x -> scaled q @ K^T (head block-diagonal)
    ("seg_e",     L_EAT, L_EAT), # per-head block-ones (emotion softmax sum)
    ("vwo",       L_EAT, D2),    # attn -> (V_bd @ Wo) into output cols [D:2D]
    ("sum_l",     D2, D2),       # ELU(same)+ELU(diff) into output cols [0:D]
)
SLAB_COLS = 128
_OFF = {}
_row = 0
for _name, _rows, _cols in _SLAB_ENTRIES:
    _OFF[_name] = (_row, _rows, _cols)
    _row += _rows
SLAB_ROWS = _row  # 784


# ---------------------------------------------------------------------------
# Fused TSAM kernel: both GAT graphs (summed) + emotion attention, one shot.
# ---------------------------------------------------------------------------
def _tsam_kernel(x_ref, bias_ref, slab_ref, out_ref):
    f32 = jnp.float32

    def w(name):
        r0, rows, cols = _OFF[name]
        return slab_ref[pl.ds(r0, rows), pl.ds(0, cols)]

    x = x_ref[...]                                                    # (BN, 2D) = [x_gat | x_emo]

    # ================= GAT branch (same + diff, all heads folded) ===========
    src_e = jnp.dot(x, w("w_src_exp"), preferred_element_type=f32)    # (BN, 128)
    dst_e = jnp.dot(x, w("w_dst_exp"), preferred_element_type=f32)    # (BN, 128)
    wh = jnp.dot(x, w("w_cat"), preferred_element_type=f32)           # (BN, 2D)

    # Row-to-lane fold of the dst scores on the MXU (no transpose/reshape):
    #   (ones @ (dst_e * eye_sel))[p, (g,h,q)] = f_dst[q, (g,h)]
    ones_bn = jnp.ones((BN, BN), f32)
    e_dst = jnp.dot(ones_bn, dst_e * w("eye_sel"), preferred_element_type=f32)

    e = src_e + e_dst
    e = jnp.where(e > 0, e, LEAKY_SLOPE * e)                          # LeakyReLU(0.2)
    e = e + bias_ref[...]                                             # additive adjacency mask

    # Segmented softmax over each 16-lane (q) group.  The per-row global max is
    # a constant within every segment, so this stabilisation is mathematically
    # exact.  (Every row has a self-loop in both graphs, so no segment is fully
    # masked -- same assumption as the standard PyTorch GAT masking.)
    e = e - jnp.max(e, axis=-1, keepdims=True)
    p = jnp.exp(e)
    seg_sum = jnp.dot(p, w("seg_gh"), preferred_element_type=f32)     # per-segment sums, broadcast
    alpha = p / seg_sum                                               # exact division

    # Per-(graph, head) aggregation as ONE matmul:
    #   M[(g,h,q), (g',d)] = Wh[q, (g',d)] * [g==g'] * [head(d)==h]
    m = jnp.dot(w("rep_sel"), wh, preferred_element_type=f32) * w("agg_mask")   # (128, 2D)
    o = jnp.dot(alpha, m, preferred_element_type=f32)                 # (BN, 2D): [same | diff]
    o = jnp.where(o > 0, o, jnp.exp(jnp.minimum(o, 0.0)) - 1.0)       # ELU (safe)

    # ==================== Emotion attention branch ==========================
    # K/V are pre-projected host-side; Wq@K^T and V_bd@Wo are folded constants.
    s = jnp.dot(x, w("wqkt"), preferred_element_type=f32)             # (BN, H*E)
    s = s - jnp.max(s, axis=-1, keepdims=True)
    ps = jnp.exp(s)
    a = ps / jnp.dot(ps, w("seg_e"), preferred_element_type=f32)      # segmented softmax

    # One lane-dense store: cols [0:D] = ELU(same)+ELU(diff), cols [D:2D] = emo.
    out = (jnp.dot(o, w("sum_l"), preferred_element_type=f32)
           + jnp.dot(a, w("vwo"), preferred_element_type=f32))        # (BN, 2D)
    out_ref[...] = out.astype(out_ref.dtype)


# ---------------------------------------------------------------------------
# One-time weight preparation (NOT per forward call).
# ---------------------------------------------------------------------------
def prepare_tsam_params(params, emotion_embs):
    f32 = jnp.float32
    w_cat_core = jnp.concatenate([params["gat_same_w"], params["gat_diff_w"]], axis=1)  # (D, 2D)

    def score_pack(a_heads):  # (H, DH) -> (D, H) head-block-diagonal
        return jnp.einsum("hd,hk->hdk", a_heads,
                          jnp.eye(H_GAT, dtype=f32)).reshape(D, H_GAT)

    def graph_pack(a_same, a_diff):  # -> (2D, 2H) graph-block-diagonal
        top = jnp.concatenate([score_pack(a_same), jnp.zeros((D, H_GAT), f32)], axis=1)
        bot = jnp.concatenate([jnp.zeros((D, H_GAT), f32), score_pack(a_diff)], axis=1)
        return jnp.concatenate([top, bot], axis=0)

    def gat_rows(mat):   # weights contracting with the x_gat half of x_cat
        return jnp.concatenate([mat, jnp.zeros((D, mat.shape[1]), f32)], axis=0)

    def emo_rows(mat):   # weights contracting with the x_emo half of x_cat
        return jnp.concatenate([jnp.zeros((D, mat.shape[1]), f32), mat], axis=0)

    a_src_pack = graph_pack(params["gat_same_asrc"], params["gat_diff_asrc"])   # (2D, 2H)
    a_dst_pack = graph_pack(params["gat_same_adst"], params["gat_diff_adst"])
    expand_gh = jnp.kron(jnp.eye(GH, dtype=f32), jnp.ones((1, BN), f32))        # (2H, 128)

    mats = {}
    mats["w_src_exp"] = gat_rows(w_cat_core @ a_src_pack @ expand_gh)           # (2D, 128)
    mats["w_dst_exp"] = gat_rows(w_cat_core @ a_dst_pack @ expand_gh)           # (2D, 128)
    mats["w_cat"] = gat_rows(w_cat_core)                                        # (2D, 2D)
    mats["eye_sel"] = jnp.tile(jnp.eye(BN, dtype=f32), (1, GH))                 # (BN, 128)
    mats["seg_gh"] = jnp.kron(jnp.eye(GH, dtype=f32), jnp.ones((BN, BN), f32))  # (128, 128)
    mats["rep_sel"] = jnp.tile(jnp.eye(BN, dtype=f32), (GH, 1))                 # (128, BN)

    r = jnp.arange(L_GAT)
    rg, rh = r // (H_GAT * BN), (r % (H_GAT * BN)) // BN
    c = jnp.arange(D2)
    cg, ch = c // D, (c % D) // DH_GAT
    mats["agg_mask"] = ((rg[:, None] == cg[None, :])
                        & (rh[:, None] == ch[None, :])).astype(f32)             # (128, 2D)

    # Emotion attention: fold the batch-invariant K/V projections and Wo.
    k = emotion_embs @ params["eat_wk"]                                         # (E, D)
    v = emotion_embs @ params["eat_wv"]                                         # (E, D)
    head_of_d = jnp.arange(D) // DH_EAT
    head_of_l = jnp.arange(L_EAT) // E
    kmask = (head_of_d[:, None] == head_of_l[None, :]).astype(f32)              # (D, H*E)
    kt_bd = jnp.tile(k.T, (1, H_EAT)) * kmask * (1.0 / (DH_EAT ** 0.5))         # (D, H*E)
    mats["wqkt"] = emo_rows(params["eat_wq"] @ kt_bd)                           # (2D, H*E)
    mats["seg_e"] = jnp.kron(jnp.eye(H_EAT, dtype=f32), jnp.ones((E, E), f32))  # (H*E, H*E)
    vmask = (head_of_l[:, None] == head_of_d[None, :]).astype(f32)              # (H*E, D)
    v_bd = jnp.tile(v, (H_EAT, 1)) * vmask                                      # (H*E, D)
    mats["vwo"] = jnp.concatenate(
        [jnp.zeros((L_EAT, D), f32), v_bd @ params["eat_wo"]], axis=1)          # (H*E, 2D)
    mats["sum_l"] = jnp.concatenate(
        [jnp.concatenate([jnp.eye(D, dtype=f32), jnp.eye(D, dtype=f32)], axis=0),
         jnp.zeros((D2, D), f32)], axis=1)                                      # (2D, 2D)

    slab = jnp.zeros((SLAB_ROWS, SLAB_COLS), f32)
    for name, (r0, rows, cols) in _OFF.items():
        m = mats[name]
        assert m.shape == (rows, cols), (name, m.shape)
        slab = slab.at[r0:r0 + rows, 0:cols].set(m)
    return {"slab": slab}


# ---------------------------------------------------------------------------
# Per-call host-side prep (adjacency is a forward input, so this is per call).
# ---------------------------------------------------------------------------
def _block_diag_adj(adj_b):
    """(B, N, N) per-dialogue adjacency -> block-diagonal (B*N, B*N)."""
    eye_b = jnp.eye(B, dtype=adj_b.dtype)
    return jnp.einsum("bij,bc->bicj", adj_b, eye_b).reshape(BN, BN)


def _fold_adj_bias(adj_same_b, adj_diff_b):
    """Additive mask bias pre-tiled to the folded (BN, 2*H*BN) score layout."""
    parts = []
    for adj_b in (adj_same_b, adj_diff_b):
        adj_bd = _block_diag_adj(adj_b)
        bias = jnp.where(adj_bd > 0, 0.0, NEG_INF).astype(jnp.float32)
        parts.append(jnp.tile(bias, (1, H_GAT)))      # heads outer, q inner
    return jnp.concatenate(parts, axis=-1)            # (BN, 128)


# ---------------------------------------------------------------------------
# TSAMLayer forward (use_gat=True, speaker_relation=True, use_emo_type='emo_att')
# ---------------------------------------------------------------------------
def tsam_layer_forward(outputs_gat, outputs_emo, adj_same_b, adj_diff_b, packed):
    x_cat = jnp.concatenate(
        [outputs_gat.reshape(BN, D), outputs_emo.reshape(BN, D)], axis=-1)   # (BN, 2D)
    adj_bias = _fold_adj_bias(adj_same_b, adj_diff_b)                        # (BN, 128)

    vmem = pltpu.MemorySpace.VMEM
    out = pl.pallas_call(
        _tsam_kernel,
        out_shape=jax.ShapeDtypeStruct((BN, D2), jnp.float32),
        in_specs=[pl.BlockSpec(memory_space=vmem)] * 3,
        out_specs=pl.BlockSpec(memory_space=vmem),
    )(x_cat, adj_bias, packed["slab"])

    gat_h = out[:, :D].reshape(B, N, D)
    emo_h = out[:, D:].reshape(B, N, D)
    return gat_h, emo_h


# ---------------------------------------------------------------------------
# Pure-JAX reference (per-dialogue, per-head) for a correctness sanity check.
# ---------------------------------------------------------------------------
def _gat_ref(x, adj, w, a_src, a_dst):
    def one(xb, adjb):
        wh = xb @ w
        outs = []
        for h in range(H_GAT):
            wh_h = wh[:, h * DH_GAT:(h + 1) * DH_GAT]
            f_src = wh_h @ a_src[h][:, None]
            f_dst = wh_h @ a_dst[h][:, None]
            e = f_src + f_dst.T
            e = jnp.where(e > 0, e, LEAKY_SLOPE * e)
            e = jnp.where(adjb > 0, e, NEG_INF)
            alpha = jax.nn.softmax(e, axis=-1)
            outs.append(alpha @ wh_h)
        o = jnp.concatenate(outs, axis=-1)
        return jnp.where(o > 0, o, jnp.exp(o) - 1.0)
    return jax.vmap(one)(x, adj)


def _eat_ref(x, emo, wq, wk, wv, wo):
    def one(xb):
        q, k, v = xb @ wq, emo @ wk, emo @ wv
        outs = []
        for h in range(H_EAT):
            sl = slice(h * DH_EAT, (h + 1) * DH_EAT)
            s = (q[:, sl] @ k[:, sl].T) / (DH_EAT ** 0.5)
            outs.append(jax.nn.softmax(s, axis=-1) @ v[:, sl])
        return jnp.concatenate(outs, axis=-1) @ wo
    return jax.vmap(one)(x)


# ---------------------------------------------------------------------------
if __name__ == "__main__":
    key = jax.random.PRNGKey(0)
    ks = jax.random.split(key, 12)

    outputs_gat = jax.random.normal(ks[0], (B, N, D), jnp.float32)
    outputs_emo = jax.random.normal(ks[1], (B, N, D), jnp.float32)
    emotion_embs = jax.random.normal(ks[2], (E, D), jnp.float32)

    # Deterministic adjacency: causal window of 3, split by alternating speakers,
    # plus self-loops on both graphs (guarantees no fully-masked softmax row).
    idx = jnp.arange(N)
    causal = ((idx[:, None] - idx[None, :]) >= 0) & ((idx[:, None] - idx[None, :]) <= 3)
    spk = idx % 2
    same = (spk[:, None] == spk[None, :])
    eye = jnp.eye(N, dtype=bool)
    adj_same = ((causal & same) | eye).astype(jnp.float32)
    adj_diff = ((causal & ~same) | eye).astype(jnp.float32)
    adj_same_b = jnp.broadcast_to(adj_same, (B, N, N))
    adj_diff_b = jnp.broadcast_to(adj_diff, (B, N, N))

    scale = 0.1
    params = {
        "gat_same_w":    scale * jax.random.normal(ks[3], (D, D), jnp.float32),
        "gat_same_asrc": scale * jax.random.normal(ks[4], (H_GAT, DH_GAT), jnp.float32),
        "gat_same_adst": scale * jax.random.normal(ks[5], (H_GAT, DH_GAT), jnp.float32),
        "gat_diff_w":    scale * jax.random.normal(ks[6], (D, D), jnp.float32),
        "gat_diff_asrc": scale * jax.random.normal(ks[7], (H_GAT, DH_GAT), jnp.float32),
        "gat_diff_adst": scale * jax.random.normal(ks[8], (H_GAT, DH_GAT), jnp.float32),
        "eat_wq": scale * jax.random.normal(ks[9],  (D, D), jnp.float32),
        "eat_wk": scale * jax.random.normal(ks[10], (D, D), jnp.float32),
        "eat_wv": scale * jax.random.normal(ks[11], (D, D), jnp.float32),
        "eat_wo": scale * jax.random.normal(jax.random.PRNGKey(42), (D, D), jnp.float32),
    }

    # One-time packing of weights / selector constants (not per forward call).
    packed = prepare_tsam_params(params, emotion_embs)

    fwd = jax.jit(tsam_layer_forward)
    gat_h, emo_h = jax.block_until_ready(
        fwd(outputs_gat, outputs_emo, adj_same_b, adj_diff_b, packed))

    # Sanity check against pure-JAX reference.
    gat_ref = (_gat_ref(outputs_gat, adj_same_b, params["gat_same_w"],
                        params["gat_same_asrc"], params["gat_same_adst"])
               + _gat_ref(outputs_gat, adj_diff_b, params["gat_diff_w"],
                          params["gat_diff_asrc"], params["gat_diff_adst"]))
    emo_ref = _eat_ref(outputs_emo, emotion_embs, params["eat_wq"],
                       params["eat_wk"], params["eat_wv"], params["eat_wo"])

    assert gat_h.shape == (B, N, D) and emo_h.shape == (B, N, D)
    assert jnp.max(jnp.abs(gat_h - gat_ref)) < 1e-2
    assert jnp.max(jnp.abs(emo_h - emo_ref)) < 1e-2

    print("KERNEL_OK")
</pallas_src>

<mosaic_0001>
module attributes {stable_mosaic.version = 11 : i64} {
  func.func @_tsam_kernel(%arg0: memref<16x64xf32, #tpu.memory_space<vmem>>, %arg1: memref<16x128xf32, #tpu.memory_space<vmem>>, %arg2: memref<784x128xf32, #tpu.memory_space<vmem>>, %arg3: memref<16x64xf32, #tpu.memory_space<vmem>>) attributes {dimension_semantics = [], scalar_prefetch = 0 : i64, scratch_operands = 0 : i64, tpu.core_type = #tpu.core_type<tc>} {
    %c0 = arith.constant 0 : index
    %c0_0 = arith.constant 0 : index
    %0 = vector.load %arg0[%c0, %c0_0] : memref<16x64xf32, #tpu.memory_space<vmem>>, vector<16x64xf32>
    %c0_1 = arith.constant 0 : index
    %c0_2 = arith.constant 0 : index
    %1 = vector.load %arg2[%c0_1, %c0_2] : memref<784x128xf32, #tpu.memory_space<vmem>>, vector<64x128xf32>
    %cst = arith.constant dense<0.000000e+00> : vector<16x128xf32>
    %2 = tpu.matmul %0, %1, %cst {dimension_numbers = #tpu.dot_dimension_numbers<[1], [0], [0], [1], [0, 0, 1, 1], [], []>} : vector<16x64xf32>, vector<64x128xf32>, vector<16x128xf32> -> vector<16x128xf32>
    %c64 = arith.constant 64 : index
    %c0_3 = arith.constant 0 : index
    %3 = vector.load %arg2[%c64, %c0_3] : memref<784x128xf32, #tpu.memory_space<vmem>>, vector<64x128xf32>
    %cst_4 = arith.constant dense<0.000000e+00> : vector<16x128xf32>
    %4 = tpu.matmul %0, %3, %cst_4 {dimension_numbers = #tpu.dot_dimension_numbers<[1], [0], [0], [1], [0, 0, 1, 1], [], []>} : vector<16x64xf32>, vector<64x128xf32>, vector<16x128xf32> -> vector<16x128xf32>
    %c128 = arith.constant 128 : index
    %c0_5 = arith.constant 0 : index
    %5 = vector.load %arg2[%c128, %c0_5] : memref<784x128xf32, #tpu.memory_space<vmem>>, vector<64x64xf32>
    %cst_6 = arith.constant dense<0.000000e+00> : vector<16x64xf32>
    %6 = tpu.matmul %0, %5, %cst_6 {dimension_numbers = #tpu.dot_dimension_numbers<[1], [0], [0], [1], [0, 0, 1, 1], [], []>} : vector<16x64xf32>, vector<64x64xf32>, vector<16x64xf32> -> vector<16x64xf32>
    %cst_7 = arith.constant 1.000000e+00 : f32
    %7 = vector.broadcast %cst_7 : f32 to vector<16x16xf32>
    %c192 = arith.constant 192 : index
    %c0_8 = arith.constant 0 : index
    %8 = vector.load %arg2[%c192, %c0_8] : memref<784x128xf32, #tpu.memory_space<vmem>>, vector<16x128xf32>
    %9 = arith.mulf %4, %8 : vector<16x128xf32>
    %cst_9 = arith.constant dense<0.000000e+00> : vector<16x128xf32>
    %10 = tpu.matmul %7, %9, %cst_9 {dimension_numbers = #tpu.dot_dimension_numbers<[1], [0], [0], [1], [0, 0, 1, 1], [], []>} : vector<16x16xf32>, vector<16x128xf32>, vector<16x128xf32> -> vector<16x128xf32>
    %11 = arith.addf %2, %10 : vector<16x128xf32>
    %cst_10 = arith.constant 0.000000e+00 : f32
    %12 = vector.broadcast %cst_10 : f32 to vector<16x128xf32>
    %13 = arith.cmpf ogt, %11, %12 : vector<16x128xf32>
    %cst_11 = arith.constant 2.000000e-01 : f32
    %14 = vector.broadcast %cst_11 : f32 to vector<16x128xf32>
    %15 = arith.mulf %14, %11 : vector<16x128xf32>
    %16 = arith.select %13, %11, %15 : vector<16x128xi1>, vector<16x128xf32>
    %c0_12 = arith.constant 0 : index
    %c0_13 = arith.constant 0 : index
    %17 = vector.load %arg1[%c0_12, %c0_13] : memref<16x128xf32, #tpu.memory_space<vmem>>, vector<16x128xf32>
    %18 = arith.addf %16, %17 : vector<16x128xf32>
    %cst_14 = arith.constant dense<0xFF800000> : vector<16xf32>
    %19 = vector.multi_reduction <maximumf>, %18, %cst_14 [1] : vector<16x128xf32> to vector<16xf32>
    %20 = vector.shape_cast %19 : vector<16xf32> to vector<16x1xf32>
    %21 = vector.broadcast %20 : vector<16x1xf32> to vector<16x128xf32>
    %22 = arith.subf %18, %21 : vector<16x128xf32>
    %23 = math.exp %22 : vector<16x128xf32>
    %c208 = arith.constant 208 : index
    %c0_15 = arith.constant 0 : index
    %24 = vector.load %arg2[%c208, %c0_15] : memref<784x128xf32, #tpu.memory_space<vmem>>, vector<128x128xf32>
    %cst_16 = arith.constant dense<0.000000e+00> : vector<16x128xf32>
    %25 = tpu.matmul %23, %24, %cst_16 {dimension_numbers = #tpu.dot_dimension_numbers<[1], [0], [0], [1], [0, 0, 1, 1], [], []>} : vector<16x128xf32>, vector<128x128xf32>, vector<16x128xf32> -> vector<16x128xf32>
    %26 = arith.divf %23, %25 : vector<16x128xf32>
    %c336 = arith.constant 336 : index
    %c0_17 = arith.constant 0 : index
    %27 = vector.load %arg2[%c336, %c0_17] : memref<784x128xf32, #tpu.memory_space<vmem>>, vector<128x16xf32>
    %cst_18 = arith.constant dense<0.000000e+00> : vector<128x64xf32>
    %28 = tpu.matmul %27, %6, %cst_18 {dimension_numbers = #tpu.dot_dimension_numbers<[1], [0], [0], [1], [0, 0, 1, 1], [], []>} : vector<128x16xf32>, vector<16x64xf32>, vector<128x64xf32> -> vector<128x64xf32>
    %c464 = arith.constant 464 : index
    %c0_19 = arith.constant 0 : index
    %29 = vector.load %arg2[%c464, %c0_19] : memref<784x128xf32, #tpu.memory_space<vmem>>, vector<128x64xf32>
    %30 = arith.mulf %28, %29 : vector<128x64xf32>
    %cst_20 = arith.constant dense<0.000000e+00> : vector<16x64xf32>
    %31 = tpu.matmul %26, %30, %cst_20 {dimension_numbers = #tpu.dot_dimension_numbers<[1], [0], [0], [1], [0, 0, 1, 1], [], []>} : vector<16x128xf32>, vector<128x64xf32>, vector<16x64xf32> -> vector<16x64xf32>
    %cst_21 = arith.constant 0.000000e+00 : f32
    %32 = vector.broadcast %cst_21 : f32 to vector<16x64xf32>
    %33 = arith.cmpf ogt, %31, %32 : vector<16x64xf32>
    %cst_22 = arith.constant 0.000000e+00 : f32
    %34 = vector.broadcast %cst_22 : f32 to vector<16x64xf32>
    %35 = arith.minimumf %31, %34 : vector<16x64xf32>
    %36 = math.exp %35 : vector<16x64xf32>
    %cst_23 = arith.constant 1.000000e+00 : f32
    %37 = vector.broadcast %cst_23 : f32 to vector<16x64xf32>
    %38 = arith.subf %36, %37 : vector<16x64xf32>
    %39 = arith.select %33, %31, %38 : vector<16x64xi1>, vector<16x64xf32>
    %c592 = arith.constant 592 : index
    %c0_24 = arith.constant 0 : index
    %40 = vector.load %arg2[%c592, %c0_24] : memref<784x128xf32, #tpu.memory_space<vmem>>, vector<64x32xf32>
    %cst_25 = arith.constant dense<0.000000e+00> : vector<16x32xf32>
    %41 = tpu.matmul %0, %40, %cst_25 {dimension_numbers = #tpu.dot_dimension_numbers<[1], [0], [0], [1], [0, 0, 1, 1], [], []>} : vector<16x64xf32>, vector<64x32xf32>, vector<16x32xf32> -> vector<16x32xf32>
    %cst_26 = arith.constant dense<0xFF800000> : vector<16xf32>
    %42 = vector.multi_reduction <maximumf>, %41, %cst_26 [1] : vector<16x32xf32> to vector<16xf32>
    %43 = vector.shape_cast %42 : vector<16xf32> to vector<16x1xf32>
    %44 = vector.broadcast %43 : vector<16x1xf32> to vector<16x32xf32>
    %45 = arith.subf %41, %44 : vector<16x32xf32>
    %46 = math.exp %45 : vector<16x32xf32>
    %c656 = arith.constant 656 : index
    %c0_27 = arith.constant 0 : index
    %47 = vector.load %arg2[%c656, %c0_27] : memref<784x128xf32, #tpu.memory_space<vmem>>, vector<32x32xf32>
    %cst_28 = arith.constant dense<0.000000e+00> : vector<16x32xf32>
    %48 = tpu.matmul %46, %47, %cst_28 {dimension_numbers = #tpu.dot_dimension_numbers<[1], [0], [0], [1], [0, 0, 1, 1], [], []>} : vector<16x32xf32>, vector<32x32xf32>, vector<16x32xf32> -> vector<16x32xf32>
    %49 = arith.divf %46, %48 : vector<16x32xf32>
    %c720 = arith.constant 720 : index
    %c0_29 = arith.constant 0 : index
    %50 = vector.load %arg2[%c720, %c0_29] : memref<784x128xf32, #tpu.memory_space<vmem>>, vector<64x64xf32>
    %cst_30 = arith.constant dense<0.000000e+00> : vector<16x64xf32>
    %51 = tpu.matmul %39, %50, %cst_30 {dimension_numbers = #tpu.dot_dimension_numbers<[1], [0], [0], [1], [0, 0, 1, 1], [], []>} : vector<16x64xf32>, vector<64x64xf32>, vector<16x64xf32> -> vector<16x64xf32>
    %c688 = arith.constant 688 : index
    %c0_31 = arith.constant 0 : index
    %52 = vector.load %arg2[%c688, %c0_31] : memref<784x128xf32, #tpu.memory_space<vmem>>, vector<32x64xf32>
    %cst_32 = arith.constant dense<0.000000e+00> : vector<16x64xf32>
    %53 = tpu.matmul %49, %52, %cst_32 {dimension_numbers = #tpu.dot_dimension_numbers<[1], [0], [0], [1], [0, 0, 1, 1], [], []>} : vector<16x32xf32>, vector<32x64xf32>, vector<16x64xf32> -> vector<16x64xf32>
    %54 = arith.addf %51, %53 : vector<16x64xf32>
    %c0_33 = arith.constant 0 : index
    %c0_34 = arith.constant 0 : index
    %55 = vector.load %arg3[%c0_33, %c0_34] : memref<16x64xf32, #tpu.memory_space<vmem>>, vector<16x64xf32>
    tpu.vector_store %arg3[%c0_33, %c0_34], %54 {strides = array<i32>} : memref<16x64xf32, #tpu.memory_space<vmem>>, vector<16x64xf32>,
    return
  }
}

</mosaic_0001>

<bundles_post_ra>
// kernel: tile.19
= control target key start
LH: loop header
LB: loop body
LE: loop exit
PB: predicated region body
PF: predicated region fallthrough
CT: control target
= control target key end

     0   :  { %vm82_vm0 = vcmask 1047556   ;;  %vm84_vm1 = vcmask 130048   ;;  %s195_s9 = smov 48   ;;  %s196_s14 = smov 16   ;;  %vm103_vm2 = vcmask 523648   ;;  %vm124_vm3 = vcmask 392448   ;;  %s289_s0 = inlined_call_operand.vmem [shape: f32[16,4,16], index: 0, kind: input, shape index: {}]   ;;  %s290_s1 = inlined_call_operand.vmem [shape: f32[16,64], index: 1, kind: output, shape index: {}]  }
   0x1   :  { %v180_v0 = vld [vmem:[%s289_s0 + $0x1c] sm:$0xf]  ;;  %v181_v1 = vld [vmem:[%s289_s0 + $0x18] sm:$0xf]  ;;  %v182_v2 = vld [vmem:[%s289_s0 + $0x14] sm:$0xf] }
   0x2   :  { %48 = vst [vmem:[#allocation0 + $0x38] sm:$0xf] %v180_v0  ;;  %53 = vst [vmem:[#allocation0 + $0x30] sm:$0xf] %v181_v1  ;;  %v183_v3 = vld [vmem:[%s289_s0 + $0x10] sm:$0xf] }
   0x3   :  { %58 = vst [vmem:[#allocation0 + $0x28] sm:$0xf] %v182_v2  ;;  %v184_v4 = vld [vmem:[%s289_s0 + $0xc] sm:$0xf]  ;;  %v185_v5 = vld [vmem:[%s289_s0 + $0x8] sm:$0xf] }
   0x4   :  { %63 = vst [vmem:[#allocation0 + $0x20] sm:$0xf] %v183_v3  ;;  %68 = vst [vmem:[#allocation0 + $0x18] sm:$0xf] %v184_v4  ;;  %v186_v6 = vld [vmem:[%s289_s0 + $0x4] sm:$0xf] }
   0x5   :  { %73 = vst [vmem:[#allocation0 + $0x10] sm:$0xf] %v185_v5  ;;  %v78_v7 = vld [vmem:[%s289_s0] sm:$0xf]  ;;  %77 = vst [vmem:[#allocation0 + $0x8] sm:$0xf] %v186_v6 }
   0x6   :  { %79 = vst [vmem:[#allocation0] sm:$0xf] %v78_v7  ;;  %v172_v8 = vld [vmem:[%s289_s0 + $0x3c] sm:$0xf]  ;;  %v173_v9 = vld [vmem:[%s289_s0 + $0x38] sm:$0xf] }
   0x7   :  { %8 = vst [vmem:[#allocation0 + $0x78] sm:$0xf] %v172_v8  ;;  %13 = vst [vmem:[#allocation0 + $0x70] sm:$0xf] %v173_v9  ;;  %v174_v10 = vld [vmem:[%s289_s0 + $0x34] sm:$0xf] }
   0x8   :  { %v175_v11 = vld [vmem:[%s289_s0 + $0x30] sm:$0xf]  ;;  %v176_v12 = vld [vmem:[%s289_s0 + $0x2c] sm:$0xf]  ;;  %18 = vst [vmem:[#allocation0 + $0x68] sm:$0xf] %v174_v10 }
   0x9   :  { %23 = vst [vmem:[#allocation0 + $0x60] sm:$0xf] %v175_v11  ;;  %28 = vst [vmem:[#allocation0 + $0x58] sm:$0xf] %v176_v12  ;;  %v177_v13 = vld [vmem:[%s289_s0 + $0x28] sm:$0xf] }
   0xa   :  { %v178_v14 = vld [vmem:[%s289_s0 + $0x24] sm:$0xf]  ;;  %v179_v15 = vld [vmem:[%s289_s0 + $0x20] sm:$0xf]  ;;  %33 = vst [vmem:[#allocation0 + $0x50] sm:$0xf] %v177_v13 }
   0xb   :  { %38 = vst [vmem:[#allocation0 + $0x48] sm:$0xf] %v178_v14  ;;  %43 = vst [vmem:[#allocation0 + $0x40] sm:$0xf] %v179_v15  ;;  %s194_s0 = smov 32   ;;  %vm145_vm4 = vcmask 261248  }
   0xc   :  { %v119_v16 = vld [vmem:[#allocation0 + $0x2] ss:$8 sm:$0xf0]   ;;  %v98_v17 = vld [vmem:[#allocation0 + $0x3] ss:$8 sm:$0xf0]  }
   0xd   :  { %v117_v18 = vld [vmem:[#allocation0 + $0x2] ss:$8 sm:$0xf]   ;;  %v96_v19 = vld [vmem:[#allocation0 + $0x3] ss:$8 sm:$0xf]  }
   0xe   :  { %v121_v20 = vsel %vm82_vm0, %v119_v16, %v117_v18  ;;  %v100_v21 = vsel %vm82_vm0, %v98_v17, %v96_v19  ;;  %v138_v24 = vld [vmem:[#allocation0 + $0x1] ss:$8 sm:$0xf]   ;;  %v80_v32 = vld [vmem:[#allocation0] ss:$8 sm:$0xf]  }
   0xf   :  { %122 = vrot.lane.b32.xlu1 %v121_v20, %s194_s0  ;;  %101 = vrot.lane.b32.xlu0 %v100_v21, %s195_s9  ;;  %v140_v25 = vld [vmem:[#allocation0 + $0x1] ss:$8 sm:$0xf0]   ;;  %v81_v33 = vld [vmem:[#allocation0] ss:$8 sm:$0xf0]  }
  0x10   :  { %v129_v22 = vld [vmem:[#allocation0 + $0x42] ss:$8 sm:$0xf0]   ;;  %v108_v23 = vld [vmem:[#allocation0 + $0x43] ss:$8 sm:$0xf0]   ;;  %v83_v34 = vsel %vm82_vm0, %v81_v33, %v80_v32  ;;  %v142_v38 = vsel %vm82_vm0, %v140_v25, %v138_v24 }
  0x11   :  { %v150_v31 = vld [vmem:[#allocation0 + $0x41] ss:$8 sm:$0xf0]   ;;  %v89_v36 = vld [vmem:[#allocation0 + $0x40] ss:$8 sm:$0xf0]  }
  0x12   :  { %v127_v26 = vld [vmem:[#allocation0 + $0x42] ss:$8 sm:$0xf]   ;;  %v106_v27 = vld [vmem:[#allocation0 + $0x43] ss:$8 sm:$0xf]  }
  0x13   :  { %v131_v28 = vsel %vm82_vm0, %v129_v22, %v127_v26  ;;  %v110_v29 = vsel %vm82_vm0, %v108_v23, %v106_v27  ;;  %v148_v30 = vld [vmem:[#allocation0 + $0x41] ss:$8 sm:$0xf]   ;;  %v87_v35 = vld [vmem:[#allocation0 + $0x40] ss:$8 sm:$0xf]  }
  0x14   :  { %132 = vrot.lane.b32.xlu1 %v131_v28, %s194_s0  ;;  %111 = vrot.lane.b32.xlu0 %v110_v29, %s195_s9  ;;  %v152_v37 = vsel %vm82_vm0, %v150_v31, %v148_v30  ;;  %85 = vst.msk [vmem:[%s290_s1] sm:$0xff] %vm84_vm1, %v83_v34   ;;  %v91_v39 = vsel %vm82_vm0, %v89_v36, %v87_v35 }
  0x15   :  { %187 = vst.msk [vmem:[%s290_s1 + $0x8] sm:$0xff] %vm84_vm1, %v91_v39  }
  0x18   :  { %153 = vrot.lane.b32.xlu1 %v152_v37, %s196_s14  ;;  %143 = vrot.lane.b32.xlu0 %v142_v38, %s196_s14 }
  0x81   :  { %v123_v40 = vpop.permute.xlu1 %122   ;;  %v102_v41 = vpop.permute.xlu0 %101  }
  0x82   :  { %104 = vst.msk [vmem:[%s290_s1] sm:$0xff] %vm103_vm2, %v102_v41  }
  0x83   :  { %125 = vst.msk [vmem:[%s290_s1] sm:$0xff] %vm124_vm3, %v123_v40  }
  0x86   :  { %v133_v42 = vpop.permute.xlu1 %132   ;;  %v112_v43 = vpop.permute.xlu0 %111  }
  0x87   :  { %188 = vst.msk [vmem:[%s290_s1 + $0x8] sm:$0xff] %vm103_vm2, %v112_v43  }
  0x88   :  { %189 = vst.msk [vmem:[%s290_s1 + $0x8] sm:$0xff] %vm124_vm3, %v133_v42  }
  0x8a   :  { %v154_v44 = vpop.permute.xlu1 %153   ;;  %v144_v45 = vpop.permute.xlu0 %143  }
  0x8b   :  { %190 = vst.msk [vmem:[%s290_s1 + $0x8] sm:$0xff] %vm145_vm4, %v154_v44   ;;  %146 = vst.msk [vmem:[%s290_s1] sm:$0xff] %vm145_vm4, %v144_v45  }

// kernel: tsam_layer_forward.1
= control target key start
LH: loop header
LB: loop body
LE: loop exit
PB: predicated region body
PF: predicated region fallthrough
CT: control target
= control target key end

     0   :  { %8 = vsyncpa [#allocation3], 0  ;;  %s1774_s12 = smov [#allocation2]   ;;  %s1892_s0 = inlined_call_operand.vmem [shape: f32[16,64], index: 0, kind: input, shape index: {}]   ;;  %s1893_s1 = inlined_call_operand.vmem [shape: f32[16,128], index: 1, kind: input, shape index: {}]   ;;  %s1894_s2 = inlined_call_operand.hbm [shape: f32[784,128], index: 2, kind: input, shape index: {}]   ;;  %s1895_s3 = inlined_call_operand.vmem [shape: f32[16,64], index: 3, kind: output, shape index: {}]  }
   0x1   :  { %s18_s13 = sshll.u32 %s1774_s12, 4  ;;  %s1750_s16 = scalar_lea.hbm %s1894_s2, 12544  ;;  %s19_s13 = int_to_ptr.vmem [resolvable:$true] %s18_s13 }
   0x2   :  { %p1751_p0 = scmp.ne.s32.totalorder %s1894_s2, %s1750_s16  ;;  %p1754_p1 = scmp.lt.u32.totalorder %s1750_s16, %s1894_s2 }
   0x4   :  { %p1756_p2 = pnand %p1754_p1, %p1751_p0 }
   0x6   :  { %1759 = shalt.err (!%p1756_p2)
}
   0x7   :  { %s1760_s21 = scalar_lea.vmem %s19_s13, 12544  ;;  %p1765_p4 = scmp.lt.s32.totalorder %s19_s13, %s19_s13 }
   0x8   :  { %p1761_p3 = scmp.ne.s32.totalorder %s19_s13, %s1760_s21  ;;  %p1766_p5 = scmp.lt.s32.totalorder %s1760_s21, %s1760_s21 }
   0xa   :  { %p1767_p6 = por %p1766_p5, %p1765_p4 }
   0xc   :  { %p1768_p7 = pnand %p1767_p6, %p1761_p3 }
   0xe   :  { %1771 = shalt.err (!%p1768_p7)
}
   0xf   :  { %s1775_s22 = smov 128   ;;  %s1776_s23 = smov 8  }
  0x10   :  { %24 = dma.hbm_to_vmem [thread:$0]  %s1894_s2, 12544, %s19_s13, [#allocation3], %s1775_s22, %s1775_s22, %s1776_s23  }
  0x11   :  { %1772 = dma.done.wait [#allocation3], 12544  }
  0x12   :  { %1773 = vsyncadd [#allocation3], 4294954752  ;;  %v38_v0 = vld [vmem:[#allocation2 + $0x40] sm:$0xff]  ;;  %v39_v1 = vld [vmem:[#allocation2 + $0x48] sm:$0xff]  ;;  %vm46_vm0 = vcmask 523264   ;;  %vm215_vm1 = vcmask 130048  }
  0x13   :  { %v40_v2 = vld [vmem:[#allocation2 + $0x50] sm:$0xff]  ;;  %v1554_v3 = vpack.c.bf16 %v39_v1, %v38_v0  ;;  %v41_v4 = vld [vmem:[#allocation2 + $0x58] sm:$0xff]  ;;  %v42_v6 = vld [vmem:[#allocation2 + $0x60] sm:$0xff]  ;;  %v1777_v14 = vmov 1.0   ;;  %vm895_vm4 = vcmask 261120  }
  0x14   :  { %v1558_v5 = vpack.c.bf16 %v41_v4, %v40_v2  ;;  %v43_v7 = vld [vmem:[#allocation2 + $0x68] sm:$0xff]  ;;  %v1813_v8 = vld [vmem:[%s1892_s0] sm:$0xff]  ;;  %v44_v10 = vld [vmem:[#allocation2 + $0x70] sm:$0xff]  ;;  %1374 = vmatprep.mubr.msk.f32.mxu0 %vm215_vm1, %v1777_v14 }
  0x15   :  { %1555 = vmatprep.subr.bf16.mxu1 %v1554_v3  ;;  %1348 = vmatprep.mubr.msk.f32.mxu1 %vm46_vm0, %v1813_v8  ;;  %v1562_v9 = vpack.c.bf16 %v43_v7, %v42_v6  ;;  %v45_v11 = vld [vmem:[#allocation2 + $0x78] sm:$0xff]  ;;  %v1820_v13 = vld [vmem:[%s1892_s0 + $0x8] sm:$0xff]  ;;  %v128_v15 = vld [vmem:[#allocation2 + $0x80] sm:$0xff] }
  0x16   :  { %1557 = vmatpush3.bf16.msra.mxu1 %v1554_v3  ;;  %v1566_v12 = vpack.c.bf16 %v45_v11, %v44_v10  ;;  %v129_v16 = vld [vmem:[#allocation2 + $0x88] sm:$0xff]  ;;  %v130_v17 = vld [vmem:[#allocation2 + $0x90] sm:$0xff]  ;;  %v131_v19 = vld [vmem:[#allocation2 + $0x98] sm:$0xff] }
  0x17   :  { %1559 = vmatprep.subr.bf16.mxu1 %v1558_v5  ;;  %v1570_v18 = vpack.c.bf16 %v129_v16, %v128_v15  ;;  %v1574_v20 = vpack.c.bf16 %v131_v19, %v130_v17  ;;  %v132_v21 = vld [vmem:[#allocation2 + $0xa0] sm:$0xff]  ;;  %v133_v22 = vld [vmem:[#allocation2 + $0xa8] sm:$0xff]  ;;  %v134_v24 = vld [vmem:[#allocation2 + $0xb0] sm:$0xff] }
  0x18   :  { %v1578_v23 = vpack.c.bf16 %v133_v22, %v132_v21  ;;  %v135_v25 = vld [vmem:[#allocation2 + $0xb8] sm:$0xff]  ;;  %v212_v27 = vld [vmem:[#allocation2 + $0xc8] sm:$0xff]  ;;  %v211_v28 = vld [vmem:[#allocation2 + $0xc0] sm:$0xff] }
  0x19   :  { %v1582_v26 = vpack.c.bf16 %v135_v25, %v134_v24  ;;  %v30_v32 = vld [vmem:[#allocation2] sm:$0xff]  ;;  %v31_v33 = vld [vmem:[#allocation2 + $0x8] sm:$0xff]  ;;  %v32_v37 = vld [vmem:[#allocation2 + $0x10] sm:$0xff] }
  0x1a   :  { %1561 = vmatpush3.bf16.msra.mxu1 %v1558_v5  ;;  %v1590_v36 = vpack.c.bf16 %v31_v33, %v30_v32  ;;  %v33_v38 = vld [vmem:[#allocation2 + $0x18] sm:$0xff]  ;;  %v34_v40 = vld [vmem:[#allocation2 + $0x20] sm:$0xff]  ;;  %v35_v41 = vld [vmem:[#allocation2 + $0x28] sm:$0xff] }
  0x1b   :  { %1563 = vmatprep.subr.bf16.mxu1 %v1562_v9  ;;  %v1594_v39 = vpack.c.bf16 %v33_v38, %v32_v37  ;;  %v1598_v42 = vpack.c.bf16 %v35_v41, %v34_v40  ;;  %v36_v43 = vld [vmem:[#allocation2 + $0x30] sm:$0xff]  ;;  %v37_v44 = vld [vmem:[#allocation2 + $0x38] sm:$0xff]  ;;  %v391_v48 = vld [vmem:[#allocation2 + $0xe0] sm:$0xff] }
  0x1c   :  { %v1602_v45 = vpack.c.bf16 %v37_v44, %v36_v43  ;;  %v389_v46 = vld [vmem:[#allocation2 + $0xd0] sm:$0xff]  ;;  %v390_v47 = vld [vmem:[#allocation2 + $0xd8] sm:$0xff]  ;;  %v392_v50 = vld [vmem:[#allocation2 + $0xe8] sm:$0xff] }
  0x1d   :  { %v1606_v49 = vpack.c.bf16 %v390_v47, %v389_v46  ;;  %v1610_v51 = vpack.c.bf16 %v392_v50, %v391_v48  ;;  %v393_v52 = vld [vmem:[#allocation2 + $0xf0] sm:$0xff]  ;;  %v394_v53 = vld [vmem:[#allocation2 + $0xf8] sm:$0xff]  ;;  %v395_v56 = vld [vmem:[#allocation2 + $0x100] sm:$0xff] }
  0x1e   :  { %1565 = vmatpush3.bf16.msra.mxu1 %v1562_v9  ;;  %v484_v54 = vld [vmem:[#allocation2 + $0x150] sm:$0xff]  ;;  %v1614_v55 = vpack.c.bf16 %v394_v53, %v393_v52  ;;  %v396_v57 = vld [vmem:[#allocation2 + $0x108] sm:$0xff]  ;;  %v485_v62 = vld [vmem:[#allocation2 + $0x158] sm:$0xff] }
  0x1f   :  { %1567 = vmatprep.subr.bf16.mxu1 %v1566_v12  ;;  %v1618_v60 = vpack.c.bf16 %v396_v57, %v395_v56  ;;  %v375_v3 = vld [vmem:[%s1893_s1] sm:$0xff]  ;;  %v376_v7 = vld [vmem:[%s1893_s1 + $0x8] sm:$0xff]  ;;  %v397_v11 = vld [vmem:[#allocation2 + $0x110] sm:$0xff] }
  0x20   :  { %v486_v10 = vld [vmem:[#allocation2 + $0x160] sm:$0xff]  ;;  %v488_v16 = vld [vmem:[#allocation2 + $0x170] sm:$0xff]  ;;  %v489_v19 = vld [vmem:[#allocation2 + $0x178] sm:$0xff] }
  0x21   :  { %v399_v17 = vld [vmem:[#allocation2 + $0x120] sm:$0xff]  ;;  %v401_v22 = vld [vmem:[#allocation2 + $0x130] sm:$0xff]  ;;  %v491_v24 = vld [vmem:[#allocation2 + $0x188] sm:$0xff] }
  0x22   :  { %1569 = vmatpush3.bf16.msra.mxu1 %v1566_v12  ;;  %v398_v12 = vld [vmem:[#allocation2 + $0x118] sm:$0xff]  ;;  %v490_v21 = vld [vmem:[#allocation2 + $0x180] sm:$0xff]  ;;  %v495_v32 = vld [vmem:[#allocation2 + $0x1a8] sm:$0xff] }
  0x23   :  { %1571 = vmatprep.subr.bf16.mxu1 %v1570_v18  ;;  %v1622_v15 = vpack.c.bf16 %v398_v12, %v397_v11  ;;  %v812_v33 = vld [vmem:[#allocation2 + $0x250] sm:$0xff]  ;;  %v497_v37 = vld [vmem:[#allocation2 + $0x1b8] sm:$0xff]  ;;  %v498_v38 = vld [vmem:[#allocation2 + $0x1c0] sm:$0xff] }
  0x24   :  { %v694_v40 = vld [vmem:[#allocation2 + $0x1d8] sm:$0xff]  ;;  %v693_v41 = vld [vmem:[#allocation2 + $0x1d0] sm:$0xff] }
  0x25   :  { %1349 = vmatmul.mubr.msk.f32.vlgmr.msra.gmra.mrb[0].mxu1 %vm46_vm0, %v1820_v13 }
  0x26   :  { %1367 = vmatprep.mubr.msk.f32.mxu1 %vm46_vm0, %v1813_v8  ;;  %1573 = vmatpush3.bf16.msra.mxu1 %v1570_v18  ;;  %v400_v18 = vld [vmem:[#allocation2 + $0x128] sm:$0xff] }
  0x27   :  { %1575 = vmatprep.subr.bf16.mxu1 %v1574_v20 }
  0x2a   :  { %1577 = vmatpush3.bf16.msra.mxu1 %v1574_v20  ;;  %v1626_v20 = vpack.c.bf16 %v400_v18, %v399_v17 }
  0x2b   :  { %1579 = vmatprep.subr.bf16.mxu1 %v1578_v23 }
  0x2e   :  { %1581 = vmatpush3.bf16.msra.mxu1 %v1578_v23  ;;  %v402_v23 = vld [vmem:[#allocation2 + $0x138] sm:$0xff] }
  0x2f   :  { %1583 = vmatprep.subr.bf16.mxu1 %v1582_v26  ;;  %v1630_v25 = vpack.c.bf16 %v402_v23, %v401_v22 }
  0x32   :  { %1585 = vmatpush3.bf16.msra.mxu1 %v1582_v26  ;;  %v492_v26 = vld [vmem:[#allocation2 + $0x190] sm:$0xff] }
  0x33   :  { %1607 = vmatprep.subr.bf16.mxu1 %v1606_v49 }
  0x35   :  { %1368 = vmatmul.mubr.msk.f32.vlgmr.msra.gmra.mrb[2].mxu1 %vm46_vm0, %v1820_v13 }
  0x36   :  { %1609 = vmatpush3.bf16.msra.mxu1 %v1606_v49 }
  0x37   :  { %1611 = vmatprep.subr.bf16.mxu1 %v1610_v51 }
  0x3a   :  { %1613 = vmatpush3.bf16.msra.mxu1 %v1610_v51 }
  0x3b   :  { %1615 = vmatprep.subr.bf16.mxu1 %v1614_v55 }
  0x3e   :  { %1617 = vmatpush3.bf16.msra.mxu1 %v1614_v55  ;;  %v815_v55 = vld [vmem:[#allocation2 + $0x268] sm:$0xff] }
  0x3f   :  { %1619 = vmatprep.subr.bf16.mxu1 %v1618_v60 }
  0x42   :  { %1621 = vmatpush3.bf16.msra.mxu1 %v1618_v60 }
  0x43   :  { %1623 = vmatprep.subr.bf16.mxu1 %v1622_v15 }
  0x46   :  { %1625 = vmatpush3.bf16.msra.mxu1 %v1622_v15  ;;  %v699_v15 = vld [vmem:[#allocation2 + $0x200] sm:$0xff] }
  0x47   :  { %1627 = vmatprep.subr.bf16.mxu1 %v1626_v20 }
  0x4a   :  { %1629 = vmatpush3.bf16.msra.mxu1 %v1626_v20  ;;  %v702_v20 = vld [vmem:[#allocation2 + $0x218] sm:$0xff] }
  0x4b   :  { %1631 = vmatprep.subr.bf16.mxu1 %v1630_v25 }
  0x4e   :  { %1633 = vmatpush3.bf16.msra.mxu1 %v1630_v25 }
  0xf8   :  { %v1350_v29 = vpop.f32.mrb[0].mxu1 }
  0xf9   :  { %v214_v30 = vmul.f32 %v1350_v29, %v212_v27  ;;  %v119_v31 = vpop.f32.mrb[1].mxu1  ;;  %v403_v27 = vld [vmem:[#allocation2 + $0x140] sm:$0xff]  ;;  %v493_v29 = vld [vmem:[#allocation2 + $0x198] sm:$0xff] }
  0xfa   :  { %v213_v34 = vmul.f32 %v211_v28, %v119_v31  ;;  %v404_v28 = vld [vmem:[#allocation2 + $0x148] sm:$0xff]  ;;  %v494_v31 = vld [vmem:[#allocation2 + $0x1a0] sm:$0xff] }
  0xfc   :  { %v1586_v35 = vpack.c.bf16 %v214_v30, %v213_v34  ;;  %v1634_v30 = vpack.c.bf16 %v404_v28, %v403_v27  ;;  %v813_v34 = vld [vmem:[#allocation2 + $0x258] sm:$0xff]  ;;  %v704_v27 = vld [vmem:[#allocation2 + $0x228] sm:$0xff]  ;;  %v703_v28 = vld [vmem:[#allocation2 + $0x220] sm:$0xff] }
  0xfe   :  { %1587 = vmatprep.subr.bf16.mxu0 %v1586_v35  ;;  %1635 = vmatprep.subr.bf16.mxu1 %v1634_v30 }
  0xff   :  { %1589 = vmatpush3.bf16.msra.mxu0 %v1586_v35  ;;  %1637 = vmatpush3.bf16.msra.mxu1 %v1634_v30  ;;  %v1674_v35 = vpack.c.bf16 %v813_v34, %v812_v33 }
 0x100   :  { %1591 = vmatprep.subr.bf16.mxu0 %v1590_v36 }
 0x101   :  { %1675 = vmatprep.subr.bf16.mxu1 %v1674_v35 }
 0x102   :  { %1375 = vmatmul.mubr.msk.f32.vlgmr.msra.gmra.mrb[0].mxu0 %vm215_vm1, %v1777_v14  ;;  %v487_v14 = vld [vmem:[#allocation2 + $0x168] sm:$0xff] }
 0x103   :  { %1593 = vmatpush3.bf16.msra.mxu0 %v1590_v36  ;;  %1393 = vmatprep.mubr.msk.f32.mxu0 %vm46_vm0, %v1813_v8  ;;  %v496_v36 = vld [vmem:[#allocation2 + $0x1b0] sm:$0xff] }
 0x104   :  { %1595 = vmatprep.subr.bf16.mxu0 %v1594_v39 }
 0x107   :  { %1597 = vmatpush3.bf16.msra.mxu0 %v1594_v39  ;;  %v499_v39 = vld [vmem:[#allocation2 + $0x1c8] sm:$0xff] }
 0x108   :  { %1599 = vmatprep.subr.bf16.mxu0 %v1598_v42  ;;  %v1369_v58 = vpop.f32.mrb[2].mxu1 }
 0x109   :  { %v202_v59 = vpop.f32.mrb[3].mxu1 }
 0x10a   :  { %v1638_v61 = vpack.c.bf16 %v1369_v58, %v202_v59  ;;  %v816_v58 = vld [vmem:[#allocation2 + $0x270] sm:$0xff]  ;;  %v817_v59 = vld [vmem:[#allocation2 + $0x278] sm:$0xff] }
 0x10b   :  { %1601 = vmatpush3.bf16.msra.mxu0 %v1598_v42  ;;  %v1682_v60 = vpack.c.bf16 %v817_v59, %v816_v58 }
 0x10c   :  { %1603 = vmatprep.subr.bf16.mxu0 %v1602_v45 }
 0x10f   :  { %1605 = vmatpush3.bf16.msra.mxu0 %v1602_v45 }
 0x110   :  { %1639 = vmatprep.subr.bf16.mxu0 %v1638_v61 }
 0x112   :  { %1394 = vmatmul.mubr.msk.f32.vlgmr.msra.gmra.mrb[0].mxu0 %vm46_vm0, %v1820_v13 }
 0x113   :  { %1435 = vmatprep.mubr.msk.f32.mxu0 %vm215_vm1, %v484_v54  ;;  %1641 = vmatpush3.bf16.msra.mxu0 %v1638_v61  ;;  %v814_v54 = vld [vmem:[#allocation2 + $0x260] sm:$0xff] }
 0x114   :  { %v1678_v56 = vpack.c.bf16 %v815_v55, %v814_v54  ;;  %v818_v61 = vld [vmem:[#allocation2 + $0x280] sm:$0xff] }
 0x116   :  { %1436 = vmatmul.mubr.msk.f32.vlgmr.msra.gmra.mrb[2].mxu0 %vm215_vm1, %v485_v62  ;;  %v819_v62 = vld [vmem:[#allocation2 + $0x288] sm:$0xff] }
 0x117   :  { %1438 = vmatprep.mubr.msk.f32.mxu0 %vm215_vm1, %v486_v10 }
 0x11a   :  { %1439 = vmatmul.mubr.msk.f32.gmra.mrb[4].mxu0 %vm215_vm1, %v487_v14  ;;  %v700_v14 = vld [vmem:[#allocation2 + $0x208] sm:$0xff] }
 0x11b   :  { %1441 = vmatprep.mubr.msk.f32.mxu0 %vm215_vm1, %v488_v16 }
 0x11e   :  { %1442 = vmatmul.mubr.msk.f32.gmra.mrb[6].mxu0 %vm215_vm1, %v489_v19 }
 0x11f   :  { %1444 = vmatprep.mubr.msk.f32.mxu0 %vm215_vm1, %v490_v21  ;;  %v701_v21 = vld [vmem:[#allocation2 + $0x210] sm:$0xff] }
 0x122   :  { %1445 = vmatmul.mubr.msk.f32.gmra.mrb[8].mxu0 %vm215_vm1, %v491_v24 }
 0x123   :  { %1447 = vmatprep.mubr.msk.f32.mxu0 %vm215_vm1, %v492_v26 }
 0x126   :  { %1448 = vmatmul.mubr.msk.f32.gmra.mrb[10].mxu0 %vm215_vm1, %v493_v29 }
 0x127   :  { %1450 = vmatprep.mubr.msk.f32.mxu0 %vm215_vm1, %v494_v31 }
 0x12a   :  { %1451 = vmatmul.mubr.msk.f32.gmra.mrb[12].mxu0 %vm215_vm1, %v495_v32 }
 0x12b   :  { %1453 = vmatprep.mubr.msk.f32.mxu0 %vm215_vm1, %v496_v36  ;;  %v706_v36 = vld [vmem:[#allocation2 + $0x238] sm:$0xff] }
 0x12e   :  { %1454 = vmatmul.mubr.msk.f32.gmra.mrb[14].mxu0 %vm215_vm1, %v497_v37 }
 0x12f   :  { %1456 = vmatprep.mubr.msk.f32.mxu0 %vm215_vm1, %v498_v38  ;;  %v705_v38 = vld [vmem:[#allocation2 + $0x230] sm:$0xff] }
 0x132   :  { %1457 = vmatmul.mubr.msk.f32.gmra.mrb[16].mxu0 %vm215_vm1, %v499_v39 }
 0x1e5   :  { %v1395_v63 = vpop.f32.mrb[0].mxu0 }
 0x1e6   :  { %v360_v0 = vpop.f32.mrb[1].mxu0  ;;  %v372_v1 = vmul.f32 0.2, %v1395_v63  ;;  %vm370_vm3 = vcmp.gt.f32.partialorder %v1395_v63, 0.0 }
 0x1e7   :  { %vm369_vm2 = vcmp.gt.f32.partialorder %v360_v0, 0.0  ;;  %v371_v2 = vmul.f32 0.2, %v360_v0 }
 0x1e8   :  { %v374_v6 = vsel %vm370_vm3, %v1395_v63, %v372_v1  ;;  %v1686_v63 = vpack.c.bf16 %v819_v62, %v818_v61  ;;  %v695_v1 = vld [vmem:[#allocation2 + $0x1e0] sm:$0xff]  ;;  %v908_v61 = vld [vmem:[#allocation2 + $0x290] sm:$0xff]  ;;  %v909_v62 = vld [vmem:[#allocation2 + $0x298] sm:$0xff] }
 0x1e9   :  { %v373_v4 = vsel %vm369_vm2, %v360_v0, %v371_v2  ;;  %v1845_v9 = vadd.f32 %v376_v7, %v374_v6  ;;  %v1437_v42 = vpop.f32.mrb[2].mxu0  ;;  %v696_v0 = vld [vmem:[#allocation2 + $0x1e8] sm:$0xff]  ;;  %v697_v6 = vld [vmem:[#allocation2 + $0x1f0] sm:$0xff] }
 0x1ea   :  { %v1839_v5 = vadd.f32 %v375_v3, %v373_v4  ;;  %v710_v43 = vmul.f32 %v1437_v42, %v694_v40  ;;  %v614_v44 = vpop.f32.mrb[3].mxu0 }
 0x1eb   :  { %v709_v45 = vmul.f32 %v693_v41, %v614_v44 }
 0x1ec   :  { %379 = vmax.xlane.f32.xlu0 %v1839_v5 }
 0x1ed   :  { %v1642_v46 = vpack.c.bf16 %v710_v43, %v709_v45  ;;  %v1440_v2 = vpop.f32.mrb[4].mxu0  ;;  %v708_v43 = vld [vmem:[#allocation2 + $0x248] sm:$0xff]  ;;  %v707_v45 = vld [vmem:[#allocation2 + $0x240] sm:$0xff] }
 0x1ee   :  { %v712_v3 = vmul.f32 %v1440_v2, %v696_v0  ;;  %v624_v4 = vpop.f32.mrb[5].mxu0  ;;  %v1690_v0 = vpack.c.bf16 %v909_v62, %v908_v61 }
 0x1ef   :  { %1643 = vmatprep.subr.bf16.mxu0 %v1642_v46 }
 0x1f0   :  { %381 = vmax.xlane.f32.xlu0 %v1845_v9  ;;  %1645 = vmatpush3.bf16.msra.mxu0 %v1642_v46 }
 0x279   :  { %v380_v47 = vpop.xlane.xlu0 %379 }
 0x27a   :  { %v383_v48 = vsub.f32 %v1839_v5, %v380_v47  ;;  %v711_v5 = vmul.f32 %v695_v1, %v624_v4  ;;  %v911_v1 = vld [vmem:[#allocation2 + $0x2a8] sm:$0xff] }
 0x27c   :  { %v385_v49 = vmul.f32 1.442695, %v383_v48  ;;  %v1646_v7 = vpack.c.bf16 %v712_v3, %v711_v5 }
 0x27d   :  { %v382_v50 = vpop.xlane.xlu0 %381 }
 0x27e   :  { %1730 = vpow2.f32 %v385_v49  ;;  %v384_v51 = vsub.f32 %v1845_v9, %v382_v50  ;;  %v1443_v9 = vpop.f32.mrb[6].mxu0  ;;  %1647 = vmatprep.subr.bf16.mxu0 %v1646_v7 }
 0x27f   :  { %v634_v11 = vpop.f32.mrb[7].mxu0  ;;  %1649 = vmatpush3.bf16.msra.mxu0 %v1646_v7 }
 0x280   :  { %v387_v52 = vmul.f32 1.442695, %v384_v51  ;;  %v713_v12 = vmul.f32 %v697_v6, %v634_v11  ;;  %v1446_v17 = vpop.f32.mrb[8].mxu0  ;;  %v1005_v11 = vld [vmem:[#allocation2 + $0x2b0] sm:$0xff] }
 0x281   :  { %v644_v18 = vpop.f32.mrb[9].mxu0 }
 0x282   :  { %1732 = vpow2.f32 %v387_v52  ;;  %v715_v19 = vmul.f32 %v699_v15, %v644_v18  ;;  %v1449_v23 = vpop.f32.mrb[10].mxu0  ;;  %v1007_v15 = vld [vmem:[#allocation2 + $0x2c0] sm:$0xff]  ;;  %v998_v18 = vld [vmem:[#allocation2 + $0x2d8] sm:$0xff] }
 0x283   :  { %v718_v24 = vmul.f32 %v1449_v23, %v702_v20  ;;  %v654_v25 = vpop.f32.mrb[11].mxu0 }
 0x284   :  { %v717_v26 = vmul.f32 %v701_v21, %v654_v25  ;;  %v1452_v30 = vpop.f32.mrb[12].mxu0 }
 0x285   :  { %v720_v31 = vmul.f32 %v1452_v30, %v704_v27  ;;  %v664_v32 = vpop.f32.mrb[13].mxu0 }
 0x286   :  { %v1658_v29 = vpack.c.bf16 %v718_v24, %v717_v26  ;;  %v719_v33 = vmul.f32 %v703_v28, %v664_v32  ;;  %v999_v28 = vld [vmem:[#allocation2 + $0x2e0] sm:$0xff] }
 0x288   :  { %v1864_v53 = vpop.eup %1730  ;;  %v1662_v34 = vpack.c.bf16 %v720_v31, %v719_v33 }
 0x289   :  { %1428 = vmatprep.mubr.f32.mxu1 %v1864_v53 }
 0x28c   :  { %v1867_v57 = vpop.eup %1732 }
 0x28d   :  { %1429 = vmatmul.mubr.f32.vlgmr.msra.gmra.mrb[4].mxu1 %v1867_v57 }
 0x28e   :  { %1677 = vmatpush3.bf16.msra.mxu1 %v1674_v35  ;;  %1510 = vmatprep.mubr.msk.f32.mxu1 %vm46_vm0, %v1813_v8  ;;  %v698_v8 = vld [vmem:[#allocation2 + $0x1f8] sm:$0xff]  ;;  %v1455_v35 = vpop.f32.mrb[14].mxu0 }
 0x28f   :  { %1679 = vmatprep.subr.bf16.mxu1 %v1678_v56  ;;  %v714_v10 = vmul.f32 %v1443_v9, %v698_v8  ;;  %v674_v37 = vpop.f32.mrb[15].mxu0  ;;  %v722_v39 = vmul.f32 %v1455_v35, %v706_v36  ;;  %v1001_v35 = vld [vmem:[#allocation2 + $0x2f0] sm:$0xff]  ;;  %v1002_v36 = vld [vmem:[#allocation2 + $0x2f8] sm:$0xff] }
 0x290   :  { %v721_v40 = vmul.f32 %v705_v38, %v674_v37  ;;  %v1458_v42 = vpop.f32.mrb[16].mxu0  ;;  %v1714_v38 = vpack.c.bf16 %v1002_v36, %v1001_v35 }
 0x291   :  { %v1650_v16 = vpack.c.bf16 %v714_v10, %v713_v12  ;;  %v684_v44 = vpop.f32.mrb[17].mxu0  ;;  %v724_v46 = vmul.f32 %v1458_v42, %v708_v43  ;;  %v1006_v12 = vld [vmem:[#allocation2 + $0x2b8] sm:$0xff] }
 0x292   :  { %1681 = vmatpush3.bf16.msra.mxu1 %v1678_v56  ;;  %v1666_v41 = vpack.c.bf16 %v722_v39, %v721_v40  ;;  %v723_v47 = vmul.f32 %v707_v45, %v684_v44  ;;  %v1003_v39 = vld [vmem:[#allocation2 + $0x300] sm:$0xff]  ;;  %v1004_v40 = vld [vmem:[#allocation2 + $0x308] sm:$0xff] }
 0x293   :  { %1683 = vmatprep.subr.bf16.mxu1 %v1682_v60  ;;  %1651 = vmatprep.subr.bf16.mxu0 %v1650_v16 }
 0x294   :  { %1653 = vmatpush3.bf16.msra.mxu0 %v1650_v16  ;;  %v1670_v48 = vpack.c.bf16 %v724_v46, %v723_v47  ;;  %v1008_v16 = vld [vmem:[#allocation2 + $0x2c8] sm:$0xff] }
 0x296   :  { %1685 = vmatpush3.bf16.msra.mxu1 %v1682_v60 }
 0x297   :  { %1687 = vmatprep.subr.bf16.mxu1 %v1686_v63 }
 0x29a   :  { %1689 = vmatpush3.bf16.msra.mxu1 %v1686_v63  ;;  %v910_v63 = vld [vmem:[#allocation2 + $0x2a0] sm:$0xff] }
 0x29b   :  { %v1694_v2 = vpack.c.bf16 %v911_v1, %v910_v63  ;;  %1691 = vmatprep.subr.bf16.mxu1 %v1690_v0 }
 0x29d   :  { %1511 = vmatmul.mubr.msk.f32.vlgmr.msra.gmra.mrb[6].mxu1 %vm46_vm0, %v1820_v13  ;;  %v716_v13 = vmul.f32 %v1446_v17, %v700_v14  ;;  %v1698_v14 = vpack.c.bf16 %v1006_v12, %v1005_v11  ;;  %v1702_v17 = vpack.c.bf16 %v1008_v16, %v1007_v15 }
 0x29e   :  { %1693 = vmatpush3.bf16.msra.mxu1 %v1690_v0 }
 0x29f   :  { %v1654_v22 = vpack.c.bf16 %v716_v13, %v715_v19  ;;  %1695 = vmatprep.subr.bf16.mxu1 %v1694_v2  ;;  %v997_v13 = vld [vmem:[#allocation2 + $0x2d0] sm:$0xff] }
 0x2a0   :  { %v1706_v19 = vpack.c.bf16 %v998_v18, %v997_v13 }
 0x2a1   :  { %1655 = vmatprep.subr.bf16.mxu0 %v1654_v22 }
 0x2a2   :  { %1657 = vmatpush3.bf16.msra.mxu0 %v1654_v22  ;;  %1697 = vmatpush3.bf16.msra.mxu1 %v1694_v2 }
 0x2a3   :  { %1659 = vmatprep.subr.bf16.mxu0 %v1658_v29 }
 0x2a6   :  { %1661 = vmatpush3.bf16.msra.mxu0 %v1658_v29  ;;  %v1000_v29 = vld [vmem:[#allocation2 + $0x2e8] sm:$0xff] }
 0x2a7   :  { %1663 = vmatprep.subr.bf16.mxu0 %v1662_v34 }
 0x2aa   :  { %1665 = vmatpush3.bf16.msra.mxu0 %v1662_v34  ;;  %v1710_v34 = vpack.c.bf16 %v1000_v29, %v999_v28 }
 0x2ab   :  { %1667 = vmatprep.subr.bf16.mxu0 %v1666_v41 }
 0x2ae   :  { %1669 = vmatpush3.bf16.msra.mxu0 %v1666_v41  ;;  %v1718_v41 = vpack.c.bf16 %v1004_v40, %v1003_v39 }
 0x2af   :  { %1671 = vmatprep.subr.bf16.mxu0 %v1670_v48 }
 0x2b2   :  { %1673 = vmatpush3.bf16.msra.mxu0 %v1670_v48 }
 0x2b3   :  { %1699 = vmatprep.subr.bf16.mxu0 %v1698_v14 }
 0x360   :  { %v1430_v49 = vpop.f32.mrb[4].mxu1 }
 0x361   :  { %1734 = vrcp.f32 %v1430_v49  ;;  %v471_v50 = vpop.f32.mrb[5].mxu1 }
 0x362   :  { %1736 = vrcp.f32 %v471_v50 }
 0x36b   :  { %v1735_v51 = vpop.eup %1734 }
 0x36c   :  { %v1737_v52 = vpop.eup %1736  ;;  %v483_v55 = vmul.f32 %v1735_v51, %v1867_v57 }
 0x36d   :  { %v481_v54 = vmul.f32 %v1737_v52, %v1864_v53 }
 0x36f   :  { %1491 = vmatprep.mubr.f32.mxu0 %v481_v54 }
 0x370   :  { %v1512_v56 = vpop.f32.mrb[6].mxu1  ;;  %1492 = vmatmul.mubr.f32.vlgmr.msra.gmra.mrb[18].mxu0 %v483_v55 }
 0x371   :  { %v886_v58 = vpop.f32.mrb[7].mxu1  ;;  %v899_v60 = vsel %vm895_vm4, %v1512_v56, -inf  ;;  %1701 = vmatpush3.bf16.msra.mxu0 %v1698_v14 }
 0x372   :  { %v896_v59 = vsel %vm895_vm4, %v886_v58, -inf  ;;  %1703 = vmatprep.subr.bf16.mxu0 %v1702_v17 }
 0x373   :  { %897 = vmax.xlane.f32.xlu1 %v896_v59 }
 0x375   :  { %1705 = vmatpush3.bf16.msra.mxu0 %v1702_v17 }
 0x376   :  { %1707 = vmatprep.subr.bf16.mxu0 %v1706_v19 }
 0x377   :  { %900 = vmax.xlane.f32.xlu1 %v899_v60 }
 0x400   :  { %v898_v53 = vpop.xlane.xlu1 %897 }
 0x401   :  { %v902_v57 = vsub.f32 %v886_v58, %v898_v53 }
 0x403   :  { %v904_v3 = vmul.f32 1.442695, %v902_v57 }
 0x404   :  { %v901_v4 = vpop.xlane.xlu1 %900 }
 0x405   :  { %1738 = vpow2.f32 %v904_v3  ;;  %v903_v5 = vsub.f32 %v1512_v56, %v901_v4 }
 0x407   :  { %v906_v8 = vmul.f32 1.442695, %v903_v5 }
 0x409   :  { %1740 = vpow2.f32 %v906_v8 }
 0x40f   :  { %v1739_v6 = vpop.eup %1738 }
 0x410   :  { %1521 = vmatprep.mubr.msk.f32.mxu1 %vm895_vm4, %v1739_v6 }
 0x413   :  { %v1741_v7 = vpop.eup %1740 }
 0x414   :  { %1522 = vmatmul.mubr.msk.f32.vlgmr.msra.gmra.mrb[8].mxu1 %vm895_vm4, %v1741_v7 }
 0x443   :  { %v1493_v9 = vpop.f32.mrb[18].mxu0 }
 0x444   :  { %v791_v10 = vpop.f32.mrb[19].mxu0  ;;  %v803_v24 = vmin.f32 %v1493_v9, 0.0  ;;  %vm801_vm6 = vcmp.gt.f32.partialorder %v1493_v9, 0.0 }
 0x445   :  { %v802_v20 = vmin.f32 %v791_v10, 0.0  ;;  %vm800_vm5 = vcmp.gt.f32.partialorder %v791_v10, 0.0 }
 0x446   :  { %v806_v26 = vmul.f32 1.442695, %v803_v24 }
 0x447   :  { %v804_v21 = vmul.f32 1.442695, %v802_v20 }
 0x449   :  { %1742 = vpow2.f32 %v804_v21 }
 0x453   :  { %v1743_v25 = vpop.eup %1742 }
 0x454   :  { %v1202_v31 = vadd.f32 -1.0, %v1743_v25 }
 0x456   :  { %v810_v37 = vsel %vm800_vm5, %v791_v10, %v1202_v31 }
 0x4e7   :  { %v1523_v22 = vpop.f32.mrb[8].mxu1 }
 0x4e8   :  { %1744 = vrcp.f32 %v1523_v22  ;;  %v984_v23 = vpop.f32.mrb[9].mxu1 }
 0x4e9   :  { %1746 = vrcp.f32 %v984_v23 }
 0x4ea   :  { %1748 = vpow2.f32 %v806_v26 }
 0x4f2   :  { %v1745_v27 = vpop.eup %1744 }
 0x4f3   :  { %v1747_v30 = vpop.eup %1746  ;;  %v996_v33 = vmul.f32 %v1745_v27, %v1741_v7 }
 0x4f4   :  { %v994_v32 = vmul.f32 %v1747_v30, %v1739_v6  ;;  %v1749_v42 = vpop.eup %1748 }
 0x4f5   :  { %v1203_v43 = vadd.f32 -1.0, %v1749_v42 }
 0x4f6   :  { %1532 = vmatprep.mubr.msk.f32.mxu0 %vm895_vm4, %v994_v32 }
 0x4f7   :  { %1533 = vmatmul.mubr.msk.f32.vlgmr.msra.gmra.mrb[20].mxu0 %vm895_vm4, %v996_v33  ;;  %v811_v44 = vsel %vm801_vm6, %v1493_v9, %v1203_v43 }
 0x4f8   :  { %1709 = vmatpush3.bf16.msra.mxu0 %v1706_v19  ;;  %1551 = vmatprep.mubr.msk.f32.mxu0 %vm46_vm0, %v810_v37 }
 0x4f9   :  { %1711 = vmatprep.subr.bf16.mxu0 %v1710_v34 }
 0x4fc   :  { %1713 = vmatpush3.bf16.msra.mxu0 %v1710_v34 }
 0x4fd   :  { %1715 = vmatprep.subr.bf16.mxu0 %v1714_v38 }
 0x500   :  { %1717 = vmatpush3.bf16.msra.mxu0 %v1714_v38 }
 0x501   :  { %1719 = vmatprep.subr.bf16.mxu0 %v1718_v41 }
 0x504   :  { %1721 = vmatpush3.bf16.msra.mxu0 %v1718_v41 }
 0x507   :  { %1552 = vmatmul.mubr.msk.f32.vlgmr.msra.gmra.mrb[20].mxu0 %vm46_vm0, %v811_v44 }
 0x5da   :  { %v1553_v45 = vpop.f32.mrb[20].mxu0 }
 0x5db   :  { %1172 = vst.msk [vmem:[%s1895_s3 + $0x8] sm:$0xff] %vm46_vm0, %v1553_v45  ;;  %v1162_v46 = vpop.f32.mrb[21].mxu0 }
 0x5dc   :  { %1171 = vst.msk [vmem:[%s1895_s3] sm:$0xff] %vm46_vm0, %v1162_v46 }
 0x5dd   :  { %1177 = vsyncpa [#allocation3], 1 }

</bundles_post_ra>
